<compile_context>
chip_gen: v6e
topology: v6e:2x2x1
jax: 0.10.0
libtpu: 0.0.40
codegen_flags: <defaults>
</compile_context>

<pallas_src>
import functools

import jax
import jax.numpy as jnp
from jax.experimental import pallas as pl
from jax.experimental.pallas import tpu as pltpu

EPS = 1e-5


# --------------------------------------------------------------------------- #
# In-kernel helpers
# --------------------------------------------------------------------------- #
def _welford_merge(acc_ref, tile2d, step, rows):
    """Chan-style parallel mean/M2 merge of one (rows, C) tile into a (2, C)
    accumulator ref: acc[0] = running mean, acc[1] = running M2 (sum of squared
    deviations).  Numerically robust vs a global sum / sum-of-squares."""
    tmean = jnp.mean(tile2d, axis=0, keepdims=True)                  # (1, C)
    d = tile2d - tmean
    tm2 = jnp.sum(d * d, axis=0, keepdims=True)                      # (1, C)

    @pl.when(step == 0)
    def _():
        acc_ref[...] = jnp.zeros_like(acc_ref)

    n_prev = (step * rows).astype(jnp.float32)
    n_new = float(rows)
    n_tot = n_prev + n_new
    delta = tmean - acc_ref[0:1, :]
    acc_ref[0:1, :] = acc_ref[0:1, :] + delta * (n_new / n_tot)
    acc_ref[1:2, :] = acc_ref[1:2, :] + tm2 + delta * delta * (n_prev * n_new / n_tot)


def _init_halo(pad_ref, step, tb, l, pad, lp_al, c, dtype):
    """Zero the L-halo rows of a padded staging scratch once (grid step 0); the
    interior rows are rewritten every step so the halo stays zero."""
    head, tail = pad, lp_al - pad - l
    if head == 0 and tail == 0:
        return

    @pl.when(step == 0)
    def _():
        if head:
            pad_ref[:, :head, :] = jnp.zeros((tb, head, c), dtype)
        if tail:
            pad_ref[:, head + l:, :] = jnp.zeros((tb, tail, c), dtype)


# --------------------------------------------------------------------------- #
# Pass 1: conv1 (K per-tap matmuls) + 1x1 downsample + bn1 / bn_d statistics
# --------------------------------------------------------------------------- #
def _stage1_kernel(x_ref, w1t_ref, wd_ref,
                   a1_ref, ident_ref, stats1_ref, statsd_ref,
                   xpad_ref,
                   *, tb, l, c_in, c_out, k, pad, lp_al, mm_dtype):
    step = pl.program_id(0)
    rows = tb * l

    _init_halo(xpad_ref, step, tb, l, pad, lp_al, c_in, mm_dtype)
    xpad_ref[:, pad:pad + l, :] = x_ref[...]

    # conv1 as K accumulating matmuls on sublane-shifted views (no im2col slab).
    acc = jnp.dot(xpad_ref[:, 0:l, :].reshape(rows, c_in), w1t_ref[0],
                  preferred_element_type=jnp.float32)
    for t in range(1, k):
        acc = acc + jnp.dot(xpad_ref[:, t:t + l, :].reshape(rows, c_in),
                            w1t_ref[t], preferred_element_type=jnp.float32)
    a1_ref[...] = acc.reshape(tb, l, c_out)

    # 1x1 downsample un-fused from conv1: separate matmul on the unshifted input.
    ident = jnp.dot(x_ref[...].reshape(rows, c_in), wd_ref[...],
                    preferred_element_type=jnp.float32)
    ident_ref[...] = ident.reshape(tb, l, c_out)

    _welford_merge(stats1_ref, acc, step, rows)
    _welford_merge(statsd_ref, ident, step, rows)


# --------------------------------------------------------------------------- #
# Pass 2: bn1 + relu + conv2 + bn2 statistics
# --------------------------------------------------------------------------- #
def _stage2_kernel(a1_ref, w2t_ref, scale1_ref, shift1_ref,
                   a2_ref, stats2_ref,
                   hpad_ref,
                   *, tb, l, c_out, k, pad, lp_al, mm_dtype):
    step = pl.program_id(0)
    rows = tb * l

    _init_halo(hpad_ref, step, tb, l, pad, lp_al, c_out, mm_dtype)

    # bn1 folded to a per-channel affine (stats from pass 1) + relu, written ONCE
    # into the staging scratch in the matmul dtype (bf16 on the bf16 path).
    h = jnp.maximum(a1_ref[...].reshape(rows, c_out) * scale1_ref[...]
                    + shift1_ref[...], 0.0)
    hpad_ref[:, pad:pad + l, :] = h.reshape(tb, l, c_out).astype(mm_dtype)

    acc = jnp.dot(hpad_ref[:, 0:l, :].reshape(rows, c_out), w2t_ref[0],
                  preferred_element_type=jnp.float32)
    for t in range(1, k):
        acc = acc + jnp.dot(hpad_ref[:, t:t + l, :].reshape(rows, c_out),
                            w2t_ref[t], preferred_element_type=jnp.float32)
    a2_ref[...] = acc.reshape(tb, l, c_out)

    _welford_merge(stats2_ref, acc, step, rows)


# --------------------------------------------------------------------------- #
# Pass 3: bn2 + bn_d + residual add + relu (no stats -> 'parallel' grid axis)
# --------------------------------------------------------------------------- #
def _stage3_kernel(a2_ref, ident_ref, s2_ref, sh2_ref, sd_ref, shd_ref,
                   out_ref, *, tb, l, c_out):
    rows = tb * l
    a2 = a2_ref[...].reshape(rows, c_out)
    ident = ident_ref[...].reshape(rows, c_out)
    y = (a2 * s2_ref[...] + sh2_ref[...]) + (ident * sd_ref[...] + shd_ref[...])
    out_ref[...] = jnp.maximum(y, 0.0).reshape(tb, l, c_out)


# --------------------------------------------------------------------------- #
# Host-side helpers
# --------------------------------------------------------------------------- #
def prepare_params(params, *, kernel_size, matmul_dtype=jnp.float32):
    """Pack ResidualBlock weights once per parameter update (repacking hoisted out
    of the per-forward hot path).

    Conv biases b1/b2/bd are dropped: a per-channel constant added right before a
    batch-statistics BatchNorm cancels exactly (bn(x + b) == bn(x)).  NOTE: this
    implements *training-mode* BN only; do not reuse for eval-mode running stats.
    """
    f32 = jnp.float32
    row = lambda v: jnp.asarray(v, f32).reshape(1, -1)
    w1t = jnp.transpose(jnp.asarray(params["w1"], f32), (2, 1, 0)).astype(matmul_dtype)
    w2t = jnp.transpose(jnp.asarray(params["w2"], f32), (2, 1, 0)).astype(matmul_dtype)
    wd = jnp.transpose(jnp.asarray(params["wd"], f32)[:, :, 0], (1, 0)).astype(matmul_dtype)
    assert w1t.shape[0] == kernel_size and w2t.shape[0] == kernel_size
    return dict(w1t=w1t, w2t=w2t, wd=wd,
                g1=row(params["g1"]), be1=row(params["be1"]),
                g2=row(params["g2"]), be2=row(params["be2"]),
                gd=row(params["gd"]), bed=row(params["bed"]),
                matmul_dtype=matmul_dtype)


def _auto_tile_batch(n, l, c_in, c_out, lp_al, mm_itemsize, budget_bytes=12 << 20):
    """Largest divisor of n whose per-pass working set fits a conservative VMEM
    budget (sized for v7x's 64 MiB VMEM and the default scoped limits)."""
    per_sample = (2 * l * c_in * mm_itemsize           # double-buffered x tile
                  + 2 * 2 * l * c_out * 4              # two f32 tile outputs (dbl-buf)
                  + 2 * l * c_out * 4                  # f32 tile input (pass 2/3)
                  + lp_al * max(c_in, c_out) * mm_itemsize)  # staging scratch
    cap = max(1, budget_bytes // max(per_sample, 1))
    best = 1
    for cand in range(1, n + 1):
        if n % cand == 0 and cand <= cap:
            best = cand
    return best


def _compiler_params(semantics, resident_bytes):
    vmem = int(min(max(4 * resident_bytes + (4 << 20), 16 << 20), 48 << 20))
    return pltpu.CompilerParams(dimension_semantics=semantics,
                                vmem_limit_bytes=vmem)


def _bn_affine(stats, gamma, beta, count):
    """Fold training-mode BN (biased variance, eps=1e-5) into per-channel
    scale/shift rows from a (2, C) [mean, M2] accumulator."""
    mean = stats[0:1, :]
    var = stats[1:2, :] / count
    scale = gamma * jax.lax.rsqrt(var + EPS)
    return scale, beta - mean * scale


# --------------------------------------------------------------------------- #
# Forward pass (NLC core + NCL adapter)
# --------------------------------------------------------------------------- #
def residual_block_nlc(x_nlc, prep, *, kernel_size, padding, tile_batch=None):
    """x_nlc: (N, L, C_in).  Returns (N, L, C_out).  Three batch-tiled passes."""
    n, l, c_in = x_nlc.shape
    k, pad = kernel_size, padding
    c_out = prep["w1t"].shape[-1]
    mm_dtype = prep["matmul_dtype"]
    mm_size = jnp.dtype(mm_dtype).itemsize
    assert 2 * pad == k - 1, "stride-1 'same' residual block expected"

    lp_al = -(-(l + 2 * pad) // 8) * 8                  # padded L, sublane-aligned
    tb = tile_batch if tile_batch is not None else _auto_tile_batch(
        n, l, c_in, c_out, lp_al, mm_size)
    assert n % tb == 0, "tile_batch must divide the batch size"
    grid = (n // tb,)
    count = float(n * l)

    # Cast the staged input once in the wrapper (bf16 path halves the x HBM read).
    x_in = x_nlc.astype(mm_dtype)

    tile_spec = lambda c: pl.BlockSpec((tb, l, c), lambda i: (i, 0, 0))
    full2d = lambda a: pl.BlockSpec(a.shape, lambda i: (0, 0))
    full3d = lambda a: pl.BlockSpec(a.shape, lambda i: (0, 0, 0))
    stats_spec = pl.BlockSpec((2, c_out), lambda i: (0, 0))      # resident accumulator
    stats_shape = jax.ShapeDtypeStruct((2, c_out), jnp.float32)
    act_shape = jax.ShapeDtypeStruct((n, l, c_out), jnp.float32)

    # ---- pass 1: conv1 + downsample + bn1 / bn_d statistics ------------------
    k1 = functools.partial(_stage1_kernel, tb=tb, l=l, c_in=c_in, c_out=c_out,
                           k=k, pad=pad, lp_al=lp_al, mm_dtype=mm_dtype)
    a1, ident, stats1, statsd = pl.pallas_call(
        k1,
        grid=grid,
        in_specs=[tile_spec(c_in), full3d(prep["w1t"]), full2d(prep["wd"])],
        out_specs=[tile_spec(c_out), tile_spec(c_out), stats_spec, stats_spec],
        out_shape=(act_shape, act_shape, stats_shape, stats_shape),
        scratch_shapes=[pltpu.VMEM((tb, lp_al, c_in), mm_dtype)],
        compiler_params=_compiler_params(
            ("arbitrary",),
            tb * l * (c_in * mm_size + 2 * c_out * 4) + tb * lp_al * c_in * mm_size),
        cost_estimate=pl.CostEstimate(
            flops=2 * n * l * c_in * c_out * (k + 1),
            transcendentals=0,
            bytes_accessed=x_in.size * mm_size + 2 * n * l * c_out * 4),
    )(x_in, prep["w1t"], prep["wd"])

    scale1, shift1 = _bn_affine(stats1, prep["g1"], prep["be1"], count)

    # ---- pass 2: bn1 + relu + conv2 + bn2 statistics --------------------------
    k2 = functools.partial(_stage2_kernel, tb=tb, l=l, c_out=c_out,
                           k=k, pad=pad, lp_al=lp_al, mm_dtype=mm_dtype)
    a2, stats2 = pl.pallas_call(
        k2,
        grid=grid,
        in_specs=[tile_spec(c_out), full3d(prep["w2t"]),
                  full2d(scale1), full2d(shift1)],
        out_specs=[tile_spec(c_out), stats_spec],
        out_shape=(act_shape, stats_shape),
        scratch_shapes=[pltpu.VMEM((tb, lp_al, c_out), mm_dtype)],
        compiler_params=_compiler_params(
            ("arbitrary",),
            tb * l * c_out * 8 + tb * lp_al * c_out * mm_size),
        cost_estimate=pl.CostEstimate(
            flops=2 * n * l * k * c_out * c_out,
            transcendentals=0,
            bytes_accessed=2 * n * l * c_out * 4),
    )(a1, prep["w2t"], scale1, shift1)

    scale2, shift2 = _bn_affine(stats2, prep["g2"], prep["be2"], count)
    scaled, shiftd = _bn_affine(statsd, prep["gd"], prep["bed"], count)

    # ---- pass 3: bn2 + bn_d + residual add + relu (parallel over tiles) -------
    k3 = functools.partial(_stage3_kernel, tb=tb, l=l, c_out=c_out)
    out = pl.pallas_call(
        k3,
        grid=grid,
        in_specs=[tile_spec(c_out), tile_spec(c_out),
                  full2d(scale2), full2d(shift2), full2d(scaled), full2d(shiftd)],
        out_specs=tile_spec(c_out),
        out_shape=act_shape,
        compiler_params=_compiler_params(("parallel",), 3 * tb * l * c_out * 4),
        cost_estimate=pl.CostEstimate(
            flops=6 * n * l * c_out, transcendentals=0,
            bytes_accessed=3 * n * l * c_out * 4),
    )(a2, ident, scale2, shift2, scaled, shiftd)

    return out


def residual_block(x_ncl, prep, *, kernel_size, padding, tile_batch=None):
    """PyTorch-layout adapter: x (N, C_in, L) -> (N, C_out, L)."""
    # TODO(synk): in production keep activations in NLC end-to-end (fuse these
    # transposes into the producing/consuming ops) and call residual_block_nlc.
    x_nlc = jnp.transpose(x_ncl, (0, 2, 1))
    out_nlc = residual_block_nlc(x_nlc, prep, kernel_size=kernel_size,
                                 padding=padding, tile_batch=tile_batch)
    return jnp.transpose(out_nlc, (0, 2, 1))


# --------------------------------------------------------------------------- #
# Pure-JAX reference (PyTorch semantics: training-mode BN, with conv biases)
# --------------------------------------------------------------------------- #
def residual_block_ref(x, p, kernel_size, padding):
    def conv1d(x_ncl, w, b, stride, pad):
        out = jax.lax.conv_general_dilated(
            x_ncl, w, window_strides=(stride,), padding=[(pad, pad)],
            dimension_numbers=("NCH", "OIH", "NCH"))
        return out + b[None, :, None]

    def bn(x_ncl, g, be):
        mean = jnp.mean(x_ncl, axis=(0, 2), keepdims=True)
        var = jnp.mean((x_ncl - mean) ** 2, axis=(0, 2), keepdims=True)
        return ((x_ncl - mean) * jax.lax.rsqrt(var + EPS)
                * g[None, :, None] + be[None, :, None])

    out = jax.nn.relu(bn(conv1d(x, p["w1"], p["b1"], 1, padding), p["g1"], p["be1"]))
    out = bn(conv1d(out, p["w2"], p["b2"], 1, padding), p["g2"], p["be2"])
    ident = bn(conv1d(x, p["wd"], p["bd"], 1, 0), p["gd"], p["bed"])
    return jax.nn.relu(out + ident)


if __name__ == "__main__":
    # ResidualBlock(in_channels=4, out_channels=8, kernel_size=3, stride=1, padding=1)
    N, C_IN, C_OUT, L, K, PAD = 2, 4, 8, 16, 3, 1

    key = jax.random.PRNGKey(0)
    ks = jax.random.split(key, 13)
    nrm = lambda kk, s: (0.1 * jax.random.normal(kk, s)).astype(jnp.float32)

    params = {
        "w1": nrm(ks[0], (C_OUT, C_IN, K)),  "b1": nrm(ks[1], (C_OUT,)),
        "g1": 1.0 + nrm(ks[2], (C_OUT,)),    "be1": nrm(ks[3], (C_OUT,)),
        "w2": nrm(ks[4], (C_OUT, C_OUT, K)), "b2": nrm(ks[5], (C_OUT,)),
        "g2": 1.0 + nrm(ks[6], (C_OUT,)),    "be2": nrm(ks[7], (C_OUT,)),
        "wd": nrm(ks[8], (C_OUT, C_IN, 1)),  "bd": nrm(ks[9], (C_OUT,)),
        "gd": 1.0 + nrm(ks[10], (C_OUT,)),   "bed": nrm(ks[11], (C_OUT,)),
    }
    x = jax.random.normal(ks[12], (N, C_IN, L), dtype=jnp.float32)

    # Reference WITH conv biases -- validates that dropping them in the kernel is exact.
    ref = jax.block_until_ready(residual_block_ref(x, params, K, PAD))

    # f32 path; tile_batch=1 -> grid of 2 exercises the tiled Welford accumulators.
    prep_f32 = prepare_params(params, kernel_size=K)
    out = jax.block_until_ready(
        residual_block(x, prep_f32, kernel_size=K, padding=PAD, tile_batch=1))
    assert out.shape == (N, C_OUT, L)
    assert jnp.allclose(out, ref, atol=1e-4, rtol=1e-4), (
        f"f32 max abs diff {jnp.max(jnp.abs(out - ref))}")

    # bf16 matmul/staging path (MXU throughput lever on v6e/v7x); BN math stays f32.
    prep_bf16 = prepare_params(params, kernel_size=K, matmul_dtype=jnp.bfloat16)
    out_bf16 = jax.block_until_ready(
        residual_block(x, prep_bf16, kernel_size=K, padding=PAD))  # auto tile batch
    assert out_bf16.shape == (N, C_OUT, L)
    assert jnp.allclose(out_bf16, ref, atol=2.5e-1, rtol=0.0), (
        f"bf16 max abs diff {jnp.max(jnp.abs(out_bf16 - ref))}")

    print("KERNEL_OK")
</pallas_src>

<mosaic_0001>
module attributes {stable_mosaic.version = 11 : i64} {
  func.func @_stage1_kernel(%arg0: i32, %arg1: memref<1x16x4xf32, #tpu.memory_space<vmem>>, %arg2: memref<3x4x8xf32, #tpu.memory_space<vmem>>, %arg3: memref<4x8xf32, #tpu.memory_space<vmem>>, %arg4: memref<1x16x8xf32, #tpu.memory_space<vmem>>, %arg5: memref<1x16x8xf32, #tpu.memory_space<vmem>>, %arg6: memref<2x8xf32, #tpu.memory_space<vmem>>, %arg7: memref<2x8xf32, #tpu.memory_space<vmem>>, %arg8: memref<1x24x4xf32, #tpu.memory_space<vmem>>) attributes {dimension_semantics = [#tpu.dimension_semantics<arbitrary>], iteration_bounds = array<i64: 2>, scalar_prefetch = 0 : i64, scratch_operands = 1 : i64, tpu.core_type = #tpu.core_type<tc>, window_params = [{transform_indices = @transform_0, window_bounds = array<i64: 1, 16, 4>}, {pipeline_mode = #tpu.pipeline_mode<synchronous>, transform_indices = @transform_1, window_bounds = array<i64: 3, 4, 8>}, {pipeline_mode = #tpu.pipeline_mode<synchronous>, transform_indices = @transform_2, window_bounds = array<i64: 4, 8>}, {transform_indices = @transform_3, window_bounds = array<i64: 1, 16, 8>}, {transform_indices = @transform_4, window_bounds = array<i64: 1, 16, 8>}, {pipeline_mode = #tpu.pipeline_mode<synchronous>, transform_indices = @transform_5, window_bounds = array<i64: 2, 8>}, {pipeline_mode = #tpu.pipeline_mode<synchronous>, transform_indices = @transform_6, window_bounds = array<i64: 2, 8>}]} {
    %c0_i32 = arith.constant 0 : i32
    %0 = arith.cmpi eq, %arg0, %c0_i32 : i32
    %1 = arith.extui %0 : i1 to i32
    %c0_i32_0 = arith.constant 0 : i32
    %2 = arith.cmpi ne, %1, %c0_i32_0 : i32
    scf.if %2 {
      %cst_73 = arith.constant 0.000000e+00 : f32
      %94 = vector.broadcast %cst_73 : f32 to vector<1x1x4xf32>
      %c0_74 = arith.constant 0 : index
      %c0_75 = arith.constant 0 : index
      %c0_76 = arith.constant 0 : index
      %95 = vector.load %arg8[%c0_74, %c0_75, %c0_76] : memref<1x24x4xf32, #tpu.memory_space<vmem>>, vector<1x1x4xf32>
      tpu.vector_store %arg8[%c0_74, %c0_75, %c0_76], %94 {strides = array<i32>} : memref<1x24x4xf32, #tpu.memory_space<vmem>>, vector<1x1x4xf32>,
      %cst_77 = arith.constant 0.000000e+00 : f32
      %96 = vector.broadcast %cst_77 : f32 to vector<1x7x4xf32>
      %c0_78 = arith.constant 0 : index
      %c17 = arith.constant 17 : index
      %c0_79 = arith.constant 0 : index
      %97 = vector.load %arg8[%c0_78, %c17, %c0_79] : memref<1x24x4xf32, #tpu.memory_space<vmem>>, vector<1x7x4xf32>
      tpu.vector_store %arg8[%c0_78, %c17, %c0_79], %96 {strides = array<i32>} : memref<1x24x4xf32, #tpu.memory_space<vmem>>, vector<1x7x4xf32>,
    } else {
    }
    %c0 = arith.constant 0 : index
    %c0_1 = arith.constant 0 : index
    %c0_2 = arith.constant 0 : index
    %3 = vector.load %arg1[%c0, %c0_1, %c0_2] : memref<1x16x4xf32, #tpu.memory_space<vmem>>, vector<1x16x4xf32>
    %c0_3 = arith.constant 0 : index
    %c1 = arith.constant 1 : index
    %c0_4 = arith.constant 0 : index
    %4 = vector.load %arg8[%c0_3, %c1, %c0_4] : memref<1x24x4xf32, #tpu.memory_space<vmem>>, vector<1x16x4xf32>
    tpu.vector_store %arg8[%c0_3, %c1, %c0_4], %3 {strides = array<i32>} : memref<1x24x4xf32, #tpu.memory_space<vmem>>, vector<1x16x4xf32>,
    %c0_5 = arith.constant 0 : index
    %c0_6 = arith.constant 0 : index
    %c0_7 = arith.constant 0 : index
    %5 = vector.load %arg8[%c0_5, %c0_6, %c0_7] : memref<1x24x4xf32, #tpu.memory_space<vmem>>, vector<1x16x4xf32>
    %6 = vector.shape_cast %5 : vector<1x16x4xf32> to vector<16x4xf32>
    %c0_8 = arith.constant 0 : index
    %c0_9 = arith.constant 0 : index
    %c0_10 = arith.constant 0 : index
    %7 = vector.load %arg2[%c0_8, %c0_9, %c0_10] : memref<3x4x8xf32, #tpu.memory_space<vmem>>, vector<1x4x8xf32>
    %8 = vector.shape_cast %7 : vector<1x4x8xf32> to vector<4x8xf32>
    %cst = arith.constant dense<0.000000e+00> : vector<16x8xf32>
    %9 = tpu.matmul %6, %8, %cst {dimension_numbers = #tpu.dot_dimension_numbers<[1], [0], [0], [1], [0, 0, 1, 1], [], []>} : vector<16x4xf32>, vector<4x8xf32>, vector<16x8xf32> -> vector<16x8xf32>
    %c0_11 = arith.constant 0 : index
    %c1_12 = arith.constant 1 : index
    %c0_13 = arith.constant 0 : index
    %10 = vector.load %arg8[%c0_11, %c1_12, %c0_13] : memref<1x24x4xf32, #tpu.memory_space<vmem>>, vector<1x16x4xf32>
    %11 = vector.shape_cast %10 : vector<1x16x4xf32> to vector<16x4xf32>
    %c1_14 = arith.constant 1 : index
    %c0_15 = arith.constant 0 : index
    %c0_16 = arith.constant 0 : index
    %12 = vector.load %arg2[%c1_14, %c0_15, %c0_16] : memref<3x4x8xf32, #tpu.memory_space<vmem>>, vector<1x4x8xf32>
    %13 = vector.shape_cast %12 : vector<1x4x8xf32> to vector<4x8xf32>
    %cst_17 = arith.constant dense<0.000000e+00> : vector<16x8xf32>
    %14 = tpu.matmul %11, %13, %cst_17 {dimension_numbers = #tpu.dot_dimension_numbers<[1], [0], [0], [1], [0, 0, 1, 1], [], []>} : vector<16x4xf32>, vector<4x8xf32>, vector<16x8xf32> -> vector<16x8xf32>
    %15 = arith.addf %9, %14 : vector<16x8xf32>
    %c0_18 = arith.constant 0 : index
    %c2 = arith.constant 2 : index
    %c0_19 = arith.constant 0 : index
    %16 = vector.load %arg8[%c0_18, %c2, %c0_19] : memref<1x24x4xf32, #tpu.memory_space<vmem>>, vector<1x16x4xf32>
    %17 = vector.shape_cast %16 : vector<1x16x4xf32> to vector<16x4xf32>
    %c2_20 = arith.constant 2 : index
    %c0_21 = arith.constant 0 : index
    %c0_22 = arith.constant 0 : index
    %18 = vector.load %arg2[%c2_20, %c0_21, %c0_22] : memref<3x4x8xf32, #tpu.memory_space<vmem>>, vector<1x4x8xf32>
    %19 = vector.shape_cast %18 : vector<1x4x8xf32> to vector<4x8xf32>
    %cst_23 = arith.constant dense<0.000000e+00> : vector<16x8xf32>
    %20 = tpu.matmul %17, %19, %cst_23 {dimension_numbers = #tpu.dot_dimension_numbers<[1], [0], [0], [1], [0, 0, 1, 1], [], []>} : vector<16x4xf32>, vector<4x8xf32>, vector<16x8xf32> -> vector<16x8xf32>
    %21 = arith.addf %15, %20 : vector<16x8xf32>
    %22 = vector.shape_cast %21 : vector<16x8xf32> to vector<1x16x8xf32>
    %c0_24 = arith.constant 0 : index
    %c0_25 = arith.constant 0 : index
    %c0_26 = arith.constant 0 : index
    %23 = vector.load %arg4[%c0_24, %c0_25, %c0_26] : memref<1x16x8xf32, #tpu.memory_space<vmem>>, vector<1x16x8xf32>
    tpu.vector_store %arg4[%c0_24, %c0_25, %c0_26], %22 {strides = array<i32>} : memref<1x16x8xf32, #tpu.memory_space<vmem>>, vector<1x16x8xf32>,
    %c0_27 = arith.constant 0 : index
    %c0_28 = arith.constant 0 : index
    %c0_29 = arith.constant 0 : index
    %24 = vector.load %arg1[%c0_27, %c0_28, %c0_29] : memref<1x16x4xf32, #tpu.memory_space<vmem>>, vector<1x16x4xf32>
    %25 = vector.shape_cast %24 : vector<1x16x4xf32> to vector<16x4xf32>
    %c0_30 = arith.constant 0 : index
    %c0_31 = arith.constant 0 : index
    %26 = vector.load %arg3[%c0_30, %c0_31] : memref<4x8xf32, #tpu.memory_space<vmem>>, vector<4x8xf32>
    %cst_32 = arith.constant dense<0.000000e+00> : vector<16x8xf32>
    %27 = tpu.matmul %25, %26, %cst_32 {dimension_numbers = #tpu.dot_dimension_numbers<[1], [0], [0], [1], [0, 0, 1, 1], [], []>} : vector<16x4xf32>, vector<4x8xf32>, vector<16x8xf32> -> vector<16x8xf32>
    %28 = vector.shape_cast %27 : vector<16x8xf32> to vector<1x16x8xf32>
    %c0_33 = arith.constant 0 : index
    %c0_34 = arith.constant 0 : index
    %c0_35 = arith.constant 0 : index
    %29 = vector.load %arg5[%c0_33, %c0_34, %c0_35] : memref<1x16x8xf32, #tpu.memory_space<vmem>>, vector<1x16x8xf32>
    tpu.vector_store %arg5[%c0_33, %c0_34, %c0_35], %28 {strides = array<i32>} : memref<1x16x8xf32, #tpu.memory_space<vmem>>, vector<1x16x8xf32>,
    %cst_36 = arith.constant dense<0.000000e+00> : vector<8xf32>
    %30 = vector.multi_reduction <add>, %21, %cst_36 [0] : vector<16x8xf32> to vector<8xf32>
    %31 = vector.shape_cast %30 : vector<8xf32> to vector<1x8xf32>
    %cst_37 = arith.constant 1.600000e+01 : f32
    %32 = vector.broadcast %cst_37 : f32 to vector<1x8xf32>
    %33 = arith.divf %31, %32 : vector<1x8xf32>
    %34 = vector.broadcast %33 : vector<1x8xf32> to vector<16x8xf32>
    %35 = arith.subf %21, %34 : vector<16x8xf32>
    %36 = arith.mulf %35, %35 : vector<16x8xf32>
    %cst_38 = arith.constant dense<0.000000e+00> : vector<8xf32>
    %37 = vector.multi_reduction <add>, %36, %cst_38 [0] : vector<16x8xf32> to vector<8xf32>
    %38 = vector.shape_cast %37 : vector<8xf32> to vector<1x8xf32>
    %c0_i32_39 = arith.constant 0 : i32
    %39 = arith.cmpi eq, %arg0, %c0_i32_39 : i32
    %40 = arith.extui %39 : i1 to i32
    %c0_i32_40 = arith.constant 0 : i32
    %41 = arith.cmpi ne, %40, %c0_i32_40 : i32
    scf.if %41 {
      %cst_73 = arith.constant 0.000000e+00 : f32
      %94 = vector.broadcast %cst_73 : f32 to vector<2x8xf32>
      %c0_74 = arith.constant 0 : index
      %c0_75 = arith.constant 0 : index
      %95 = vector.load %arg6[%c0_74, %c0_75] : memref<2x8xf32, #tpu.memory_space<vmem>>, vector<2x8xf32>
      tpu.vector_store %arg6[%c0_74, %c0_75], %94 {strides = array<i32>} : memref<2x8xf32, #tpu.memory_space<vmem>>, vector<2x8xf32>,
    } else {
    }
    %c16_i32 = arith.constant 16 : i32
    %42 = arith.muli %arg0, %c16_i32 : i32
    %43 = arith.sitofp %42 : i32 to f32
    %cst_41 = arith.constant 1.600000e+01 : f32
    %44 = arith.addf %43, %cst_41 : f32
    %c0_42 = arith.constant 0 : index
    %c0_43 = arith.constant 0 : index
    %45 = vector.load %arg6[%c0_42, %c0_43] : memref<2x8xf32, #tpu.memory_space<vmem>>, vector<1x8xf32>
    %46 = arith.subf %33, %45 : vector<1x8xf32>
    %c0_44 = arith.constant 0 : index
    %c0_45 = arith.constant 0 : index
    %47 = vector.load %arg6[%c0_44, %c0_45] : memref<2x8xf32, #tpu.memory_space<vmem>>, vector<1x8xf32>
    %cst_46 = arith.constant 1.600000e+01 : f32
    %48 = arith.divf %cst_46, %44 : f32
    %49 = vector.broadcast %48 : f32 to vector<1x8xf32>
    %50 = arith.mulf %46, %49 : vector<1x8xf32>
    %51 = arith.addf %47, %50 : vector<1x8xf32>
    %c0_47 = arith.constant 0 : index
    %c0_48 = arith.constant 0 : index
    %52 = vector.load %arg6[%c0_47, %c0_48] : memref<2x8xf32, #tpu.memory_space<vmem>>, vector<1x8xf32>
    tpu.vector_store %arg6[%c0_47, %c0_48], %51 {strides = array<i32>} : memref<2x8xf32, #tpu.memory_space<vmem>>, vector<1x8xf32>,
    %c1_49 = arith.constant 1 : index
    %c0_50 = arith.constant 0 : index
    %53 = vector.load %arg6[%c1_49, %c0_50] : memref<2x8xf32, #tpu.memory_space<vmem>>, vector<1x8xf32>
    %54 = arith.addf %53, %38 : vector<1x8xf32>
    %55 = arith.mulf %46, %46 : vector<1x8xf32>
    %cst_51 = arith.constant 1.600000e+01 : f32
    %56 = arith.mulf %43, %cst_51 : f32
    %57 = arith.divf %56, %44 : f32
    %58 = vector.broadcast %57 : f32 to vector<1x8xf32>
    %59 = arith.mulf %55, %58 : vector<1x8xf32>
    %60 = arith.addf %54, %59 : vector<1x8xf32>
    %c1_52 = arith.constant 1 : index
    %c0_53 = arith.constant 0 : index
    %61 = vector.load %arg6[%c1_52, %c0_53] : memref<2x8xf32, #tpu.memory_space<vmem>>, vector<1x8xf32>
    tpu.vector_store %arg6[%c1_52, %c0_53], %60 {strides = array<i32>} : memref<2x8xf32, #tpu.memory_space<vmem>>, vector<1x8xf32>,
    %cst_54 = arith.constant dense<0.000000e+00> : vector<8xf32>
    %62 = vector.multi_reduction <add>, %27, %cst_54 [0] : vector<16x8xf32> to vector<8xf32>
    %63 = vector.shape_cast %62 : vector<8xf32> to vector<1x8xf32>
    %cst_55 = arith.constant 1.600000e+01 : f32
    %64 = vector.broadcast %cst_55 : f32 to vector<1x8xf32>
    %65 = arith.divf %63, %64 : vector<1x8xf32>
    %66 = vector.broadcast %65 : vector<1x8xf32> to vector<16x8xf32>
    %67 = arith.subf %27, %66 : vector<16x8xf32>
    %68 = arith.mulf %67, %67 : vector<16x8xf32>
    %cst_56 = arith.constant dense<0.000000e+00> : vector<8xf32>
    %69 = vector.multi_reduction <add>, %68, %cst_56 [0] : vector<16x8xf32> to vector<8xf32>
    %70 = vector.shape_cast %69 : vector<8xf32> to vector<1x8xf32>
    %c0_i32_57 = arith.constant 0 : i32
    %71 = arith.cmpi eq, %arg0, %c0_i32_57 : i32
    %72 = arith.extui %71 : i1 to i32
    %c0_i32_58 = arith.constant 0 : i32
    %73 = arith.cmpi ne, %72, %c0_i32_58 : i32
    scf.if %73 {
      %cst_73 = arith.constant 0.000000e+00 : f32
      %94 = vector.broadcast %cst_73 : f32 to vector<2x8xf32>
      %c0_74 = arith.constant 0 : index
      %c0_75 = arith.constant 0 : index
      %95 = vector.load %arg7[%c0_74, %c0_75] : memref<2x8xf32, #tpu.memory_space<vmem>>, vector<2x8xf32>
      tpu.vector_store %arg7[%c0_74, %c0_75], %94 {strides = array<i32>} : memref<2x8xf32, #tpu.memory_space<vmem>>, vector<2x8xf32>,
    } else {
    }
    %c16_i32_59 = arith.constant 16 : i32
    %74 = arith.muli %arg0, %c16_i32_59 : i32
    %75 = arith.sitofp %74 : i32 to f32
    %cst_60 = arith.constant 1.600000e+01 : f32
    %76 = arith.addf %75, %cst_60 : f32
    %c0_61 = arith.constant 0 : index
    %c0_62 = arith.constant 0 : index
    %77 = vector.load %arg7[%c0_61, %c0_62] : memref<2x8xf32, #tpu.memory_space<vmem>>, vector<1x8xf32>
    %78 = arith.subf %65, %77 : vector<1x8xf32>
    %c0_63 = arith.constant 0 : index
    %c0_64 = arith.constant 0 : index
    %79 = vector.load %arg7[%c0_63, %c0_64] : memref<2x8xf32, #tpu.memory_space<vmem>>, vector<1x8xf32>
    %cst_65 = arith.constant 1.600000e+01 : f32
    %80 = arith.divf %cst_65, %76 : f32
    %81 = vector.broadcast %80 : f32 to vector<1x8xf32>
    %82 = arith.mulf %78, %81 : vector<1x8xf32>
    %83 = arith.addf %79, %82 : vector<1x8xf32>
    %c0_66 = arith.constant 0 : index
    %c0_67 = arith.constant 0 : index
    %84 = vector.load %arg7[%c0_66, %c0_67] : memref<2x8xf32, #tpu.memory_space<vmem>>, vector<1x8xf32>
    tpu.vector_store %arg7[%c0_66, %c0_67], %83 {strides = array<i32>} : memref<2x8xf32, #tpu.memory_space<vmem>>, vector<1x8xf32>,
    %c1_68 = arith.constant 1 : index
    %c0_69 = arith.constant 0 : index
    %85 = vector.load %arg7[%c1_68, %c0_69] : memref<2x8xf32, #tpu.memory_space<vmem>>, vector<1x8xf32>
    %86 = arith.addf %85, %70 : vector<1x8xf32>
    %87 = arith.mulf %78, %78 : vector<1x8xf32>
    %cst_70 = arith.constant 1.600000e+01 : f32
    %88 = arith.mulf %75, %cst_70 : f32
    %89 = arith.divf %88, %76 : f32
    %90 = vector.broadcast %89 : f32 to vector<1x8xf32>
    %91 = arith.mulf %87, %90 : vector<1x8xf32>
    %92 = arith.addf %86, %91 : vector<1x8xf32>
    %c1_71 = arith.constant 1 : index
    %c0_72 = arith.constant 0 : index
    %93 = vector.load %arg7[%c1_71, %c0_72] : memref<2x8xf32, #tpu.memory_space<vmem>>, vector<1x8xf32>
    tpu.vector_store %arg7[%c1_71, %c0_72], %92 {strides = array<i32>} : memref<2x8xf32, #tpu.memory_space<vmem>>, vector<1x8xf32>,
    return
  }
  func.func @transform_0(%arg0: i32) -> (i32, i32, i32) {
    %c0_i32 = arith.constant 0 : i32
    %c0_i32_0 = arith.constant 0 : i32
    %c0_i32_1 = arith.constant 0 : i32
    return %arg0, %c0_i32, %c0_i32_0 : i32, i32, i32
  }
  func.func @transform_1(%arg0: i32) -> (i32, i32, i32) {
    %c0_i32 = arith.constant 0 : i32
    %c0_i32_0 = arith.constant 0 : i32
    %c0_i32_1 = arith.constant 0 : i32
    %c0_i32_2 = arith.constant 0 : i32
    return %c0_i32, %c0_i32_0, %c0_i32_1 : i32, i32, i32
  }
  func.func @transform_2(%arg0: i32) -> (i32, i32) {
    %c0_i32 = arith.constant 0 : i32
    %c0_i32_0 = arith.constant 0 : i32
    %c0_i32_1 = arith.constant 0 : i32
    return %c0_i32, %c0_i32_0 : i32, i32
  }
  func.func @transform_3(%arg0: i32) -> (i32, i32, i32) {
    %c0_i32 = arith.constant 0 : i32
    %c0_i32_0 = arith.constant 0 : i32
    %c0_i32_1 = arith.constant 0 : i32
    return %arg0, %c0_i32, %c0_i32_0 : i32, i32, i32
  }
  func.func @transform_4(%arg0: i32) -> (i32, i32, i32) {
    %c0_i32 = arith.constant 0 : i32
    %c0_i32_0 = arith.constant 0 : i32
    %c0_i32_1 = arith.constant 0 : i32
    return %arg0, %c0_i32, %c0_i32_0 : i32, i32, i32
  }
  func.func @transform_5(%arg0: i32) -> (i32, i32) {
    %c0_i32 = arith.constant 0 : i32
    %c0_i32_0 = arith.constant 0 : i32
    %c0_i32_1 = arith.constant 0 : i32
    return %c0_i32, %c0_i32_0 : i32, i32
  }
  func.func @transform_6(%arg0: i32) -> (i32, i32) {
    %c0_i32 = arith.constant 0 : i32
    %c0_i32_0 = arith.constant 0 : i32
    %c0_i32_1 = arith.constant 0 : i32
    return %c0_i32, %c0_i32_0 : i32, i32
  }
}

</mosaic_0001>

<bundles_post_ra>
// kernel: tpu_custom_call.1
= control target key start
LH: loop header
LB: loop body
LE: loop exit
PB: predicated region body
PF: predicated region fallthrough
CT: control target
= control target key end

     0   :  { %12 = vsyncpa [#allocation4], 0  ;;  %s1179_s0 = inlined_call_operand.vmem [shape: f32[2,16,4], index: 0, kind: input, shape index: {}]   ;;  %s1180_s1 = inlined_call_operand.vmem [shape: f32[3,4,8], index: 1, kind: input, shape index: {}]   ;;  %s1181_s2 = inlined_call_operand.vmem [shape: f32[4,8], index: 2, kind: input, shape index: {}]   ;;  %s1182_s3 = inlined_call_operand.vmem [shape: f32[2,16,8], index: 3, kind: output, shape index: {0}]   ;;  %s1183_s4 = inlined_call_operand.vmem [shape: f32[2,16,8], index: 4, kind: output, shape index: {1}]   ;;  %s1184_s5 = inlined_call_operand.hbm [shape: f32[2,8], index: 5, kind: output, shape index: {2}]   ;;  %s1185_s6 = inlined_call_operand.hbm [shape: f32[2,8], index: 6, kind: output, shape index: {3}]  }
   0x1   :  { %13 = vsyncpa [#allocation6], 0  ;;  %s1063_s21 = smov 0  }
   0x2 LB: > { %s1069_s22 = sadd.s32 4294967295, %s1021_s21   ;;  %p864_p0 = scmp.ge.s32.totalorder %s1021_s21, 1  ;;  %s1021_s21 = sphi %s1063_s21, %s19_s21  }
   0x3   : > { %p211_p1 = scmp.lt.s32.totalorder %s1021_s21, 3 }
   0x5   : > { %p212_p2 = pnand %p864_p0, %p211_p1 }
   0x6   : > { %p246_p3 = scmp.lt.s32.totalorder (!%p212_p2), %s1069_s22, 1  ;;  %p871_p4 = scmp.ne.s32.totalorder (!%p212_p2), %s1069_s22, 0 }
   0x7   : > { %215 = sbr.rel (%p212_p2) target bundleno = 379 (0x17b), region = 32 }
   0xc   : > { %s247_s23 = scalar_select %p246_p3, %s1069_s22, 1 }
   0xd   : > { %264 = sbr.rel (%p871_p4) target bundleno = 21 (0x15), region = 36 }
   0xe   : > { %s895_s24 = sshll.u32 %s247_s23, 4 }
   0xf   : > { %s250_s27 = scalar_lea.vmem %s1179_s0, %s895_s24  ;;  %s1081_s30 = scalar_lea.vmem %s1182_s3, %s895_s24 }
  0x10   : > { %s1086_s9 = scalar_lea.vmem %s1183_s4, %s895_s24 }
  0x12   : > { %vm265_vm0 = vcmask 24576   ;;  %vm267_vm1 = vcmask 30720   ;;  %v1023_v0 = vmov 0.0  }
  0x13   : > { %266 = vst.msk [vmem:[#allocation2] sm:$0x1] %vm265_vm0, %v1023_v0 }
  0x14   : > { %268 = vst.msk [vmem:[#allocation2 + $0x11] sm:$0x7f] %vm267_vm1, %v1023_v0 }
  0x15 PF: > { %v872_v1 = vld [vmem:[%s1180_s1 + $0x4] sm:$0xf]  ;;  %vm287_vm2 = vcmask 1043456   ;;  %v276_v2 = vld [vmem:[%s1180_s1] sm:$0xf]  ;;  %vm271_vm3 = vcmask 31744  }
  0x16   : > { %v269_v3 = vld [vmem:[%s250_s27] sm:$0xff]  ;;  %910 = vmatprep.subr.msk.mxu0 %vm287_vm2, %v872_v1  ;;  %915 = vmatprep.subr.msk.mxu1 %vm287_vm2, %v276_v2  ;;  %v879_v4 = vld [vmem:[%s1180_s1 + $0x8] sm:$0xf]  ;;  %vm540_vm4 = vcmask 64512  }
  0x17   : > { %v270_v5 = vld [vmem:[%s250_s27 + $0x8] sm:$0xff]  ;;  %v545_v6 = vld [vmem:[%s1181_s2] sm:$0xf]  ;;  %911 = vmatpush3.msk.msra.mxu0 %vm287_vm2, %v872_v1  ;;  %272 = vst.msk [vmem:[#allocation2 + $0x1] sm:$0xff] %vm271_vm3, %v269_v3  ;;  %916 = vmatpush3.msk.msra.mxu1 %vm287_vm2, %v276_v2 }
  0x18   : > { %273 = vst.msk [vmem:[#allocation2 + $0x9] sm:$0xff] %vm271_vm3, %v270_v5  ;;  %920 = vmatprep.subr.msk.mxu0 %vm287_vm2, %v879_v4  ;;  %925 = vmatprep.subr.msk.mxu1 %vm287_vm2, %v545_v6 }
  0x1e   : > { %v277_v7 = vld [vmem:[#allocation2 + $0x1] sm:$0xff] }
  0x1f   : > { %v274_v8 = vld [vmem:[#allocation2] sm:$0xff]  ;;  %v278_v9 = vld [vmem:[#allocation2 + $0x9] sm:$0xff]  ;;  %912 = vmatprep.mubr.msk.f32.mxu0 %vm271_vm3, %v277_v7 }
  0x20   : > { %917 = vmatprep.mubr.msk.f32.mxu1 %vm271_vm3, %v274_v8  ;;  %v275_v10 = vld [vmem:[#allocation2 + $0x8] sm:$0xff]  ;;  %913 = vmatmul.mubr.msk.f32.vlgmr.msra.gmra.mxu0 %vm271_vm3, %v278_v9 }
  0x21   : > { %v450_v11 = vld [vmem:[#allocation2 + $0x2] sm:$0xff]  ;;  %918 = vmatmul.mubr.msk.f32.vlgmr.msra.gmra.mxu1 %vm271_vm3, %v275_v10  ;;  %921 = vmatpush3.msk.msra.mxu0 %vm287_vm2, %v879_v4  ;;  %v451_v12 = vld [vmem:[#allocation2 + $0xa] sm:$0xff] }
  0x22   : > { %922 = vmatprep.mubr.msk.f32.mxu0 %vm271_vm3, %v450_v11  ;;  %926 = vmatpush3.msk.msra.mxu1 %vm287_vm2, %v545_v6 }
  0x23   : > { %927 = vmatprep.mubr.msk.f32.mxu1 %vm271_vm3, %v269_v3 }
  0x24   : > { %923 = vmatmul.mubr.msk.f32.vlgmr.msra.gmra.mxu0 %vm271_vm3, %v451_v12 }
  0x25   : > { %928 = vmatmul.mubr.msk.f32.vlgmr.msra.gmra.mxu1 %vm271_vm3, %v270_v5 }
  0xe0   : > { %v914_v13 = vpop.f32.mrf.mxu0 }
  0xe1   : > { %v919_v14 = vpop.f32.mrf.mxu1 }
  0xe2   : > { %v357_v15 = vpop.f32.mrf.mxu0  ;;  %v447_v17 = vadd.f32 %v919_v14, %v914_v13 }
  0xe3   : > { %v441_v16 = vpop.f32.mrf.mxu1 }
  0xe4   : > { %v924_v18 = vpop.f32.mrf.mxu0  ;;  %v442_v20 = vadd.f32 %v441_v16, %v357_v15 }
  0xe5   : > { %v929_v19 = vpop.f32.mrf.mxu1  ;;  %v539_v21 = vadd.f32 %v924_v18, %v447_v17 }
  0xe6   : > { %631 = vst.msk [vmem:[%s1086_s9 + $0x8] sm:$0xff] %vm540_vm4, %v929_v19  ;;  %v529_v22 = vpop.f32.mrf.mxu0 }
  0xe7   : > { %v621_v23 = vpop.f32.mrf.mxu1  ;;  %542 = vst.msk [vmem:[%s1081_s30 + $0x8] sm:$0xff] %vm540_vm4, %v539_v21  ;;  %v538_v24 = vadd.f32 %v529_v22, %v442_v20  ;;  %v633_v25 = vsel %vm540_vm4, %v539_v21, 0.0 }
  0xe8   : > { %630 = vst.msk [vmem:[%s1086_s9] sm:$0xff] %vm540_vm4, %v621_v23 }
  0xe9   : > { %541 = vst.msk [vmem:[%s1081_s30] sm:$0xff] %vm540_vm4, %v538_v24  ;;  %v632_v26 = vsel %vm540_vm4, %v538_v24, 0.0 }
  0xea   : > { %v634_v27 = vadd.f32 %v633_v25, %v632_v26 }
  0xec   : > { %v635_v28 = vrot.slane %v634_v27, 4 }
  0xee   : > { %v636_v29 = vadd.f32 %v635_v28, %v634_v27 }
  0xf0   : > { %v637_v30 = vrot.slane %v636_v29, 2 }
  0xf2   : > { %v638_v31 = vadd.f32 %v637_v30, %v636_v29 }
  0xf4   : > { %v639_v32 = vrot.slane %v638_v31, 1 }
  0xf6   : > { %v640_v33 = vadd.f32 %v639_v32, %v638_v31 }
  0xf8   : > { %v642_v34 = vmul.f32 0.0625, %v640_v33 }
  0xfa   : > { %v643_v35 = vsub.f32 %v538_v24, %v642_v34  ;;  %v644_v36 = vsub.f32 %v539_v21, %v642_v34 }
  0xfc   : > { %v645_v37 = vmul.f32 %v643_v35, %v643_v35  ;;  %v646_v38 = vmul.f32 %v644_v36, %v644_v36 }
  0xfe   : > { %v647_v39 = vsel %vm540_vm4, %v645_v37, 0.0  ;;  %v648_v40 = vsel %vm540_vm4, %v646_v38, 0.0 }
  0xff   : > { %v649_v41 = vadd.f32 %v648_v40, %v647_v39 }
 0x101   : > { %v650_v42 = vrot.slane %v649_v41, 4 }
 0x103   : > { %v651_v43 = vadd.f32 %v650_v42, %v649_v41 }
 0x105   : > { %v652_v44 = vrot.slane %v651_v43, 2 }
 0x107   : > { %v653_v45 = vadd.f32 %v652_v44, %v651_v43  ;;  %658 = sbr.rel (%p871_p4) target bundleno = 270 (0x10e), region = 40 }
 0x109   : > { %v654_v46 = vrot.slane %v653_v45, 1 }
 0x10b   : > { %v655_v47 = vadd.f32 %v654_v46, %v653_v45 }
 0x10c   : > { %vm659_vm5 = vcmask 58368   ;;  %v1024_v48 = vmov 0.0  }
 0x10d   : > { %660 = vst.msk [vmem:[#allocation3] sm:$0x3] %vm659_vm5, %v1024_v48 }
 0x10e PF: > { %s887_s18 = sshll.u32 %s1069_s22, 4  ;;  %v687_v49 = vsel %vm540_vm4, %v621_v23, 0.0  ;;  %v688_v50 = vsel %vm540_vm4, %v929_v19, 0.0  ;;  %vm673_vm6 = vcmask 57344  }
 0x10f   : > { %s1136_s19 = scvt.s32.f32 %s887_s18  ;;  %v689_v51 = vadd.f32 %v688_v50, %v687_v49 }
 0x111   : > { %s663_s20 = sadd.f32 16.0, %s1136_s19  ;;  %v690_v52 = vrot.slane %v689_v51, 4  ;;  %s678_s23 = smul.f32 16.0, %s1136_s19 }
 0x113   : > { %v666_v53 = vstv %s663_s20  ;;  %v691_v54 = vadd.f32 %v690_v52, %v689_v51 }
 0x114   : > { %957 = vrcp.f32 %v666_v53  ;;  %v664_v10 = vld [vmem:[#allocation3] sm:$0x1]  ;;  %v675_v12 = vld [vmem:[#allocation3 + $0x1] sm:$0x1] }
 0x115   : > { %v692_v55 = vrot.slane %v691_v54, 2  ;;  %v665_v11 = vsub.f32 %v642_v34, %v664_v10  ;;  %v676_v15 = vadd.f32 %v675_v12, %v655_v47 }
 0x117   : > { %v693_v56 = vadd.f32 %v692_v55, %v691_v54  ;;  %v677_v13 = vmul.f32 %v665_v11, %v665_v11 }
 0x119   : > { %v694_v57 = vrot.slane %v693_v56, 1 }
 0x11b   : > { %v695_v58 = vadd.f32 %v694_v57, %v693_v56 }
 0x11d   : > { %v696_v59 = vmul.f32 0.0625, %v695_v58 }
 0x11f   : > { %v697_v60 = vsub.f32 %v621_v23, %v696_v59  ;;  %v698_v61 = vsub.f32 %v929_v19, %v696_v59 }
 0x121   : > { %v958_v62 = vpop.eup %957  ;;  %v699_v63 = vmul.f32 %v697_v60, %v697_v60  ;;  %v700_v0 = vmul.f32 %v698_v61, %v698_v61 }
 0x122   : > { %930 = vpush %v958_v62 }
 0x123   : > { %v701_v1 = vsel %vm540_vm4, %v699_v63, 0.0  ;;  %v702_v2 = vsel %vm540_vm4, %v700_v0, 0.0 }
 0x124   : > { %v703_v3 = vadd.f32 %v702_v2, %v701_v1 }
 0x126   : > { %v704_v4 = vrot.slane %v703_v3, 4 }
 0x128   : > { %v705_v5 = vadd.f32 %v704_v4, %v703_v3 }
 0x12a   : > { %v706_v6 = vrot.slane %v705_v5, 2 }
 0x12c   : > { %v707_v7 = vadd.f32 %v706_v6, %v705_v5 }
 0x12e   : > { %v708_v8 = vrot.slane %v707_v7, 1 }
 0x130   : > { %v709_v9 = vadd.f32 %v708_v8, %v707_v7 }
 0x153   : > { %s931_s24 = spop %930 }
 0x154   : > { %s669_s25 = smul.f32 16.0, %s931_s24 }
 0x155   : > { %s1144_s26 = smul.f32 %s931_s24, %s678_s23 }
 0x156   : > { %v670_v14 = vstv %s669_s25 }
 0x157   : > { %v671_v16 = vmul.f32 %v670_v14, %v665_v11  ;;  %v683_v17 = vstv %s1144_s26 }
 0x158   : > { %v684_v18 = vmul.f32 %v683_v17, %v677_v13  ;;  %712 = sbr.rel (%p871_p4) target bundleno = 351 (0x15f), region = 44 }
 0x159   : > { %v672_v19 = vadd.f32 %v671_v16, %v664_v10 }
 0x15a   : > { %v685_v20 = vadd.f32 %v684_v18, %v676_v15 }
 0x15b   : > { %674 = vst.msk [vmem:[#allocation3] sm:$0x1] %vm673_vm6, %v672_v19 }
 0x15c   : > { %686 = vst.msk [vmem:[#allocation3 + $0x1] sm:$0x1] %vm673_vm6, %v685_v20 }
 0x15d   : > { %vm713_vm7 = vcmask 58368   ;;  %v1025_v21 = vmov 0.0  }
 0x15e   : > { %714 = vst.msk [vmem:[#allocation5] sm:$0x3] %vm713_vm7, %v1025_v21 }
 0x15f PF: > { %p940_p5 = scmp.eq.s32.totalorder %s1069_s22, 1  ;;  %s1026_s27 = smov [#allocation3]  }
 0x160   : > { %s749_s28 = sshll.u32 %s1026_s27, 4  ;;  %s1027_s29 = smov [#allocation5]   ;;  %s750_s28 = int_to_ptr.vmem [resolvable:$true] %s749_s28 }
 0x161   : > { %s760_s30 = sshll.u32 %s1027_s29, 4  ;;  %s959_s7 = scalar_lea.vmem %s750_s28, 32  ;;  %s761_s30 = int_to_ptr.vmem [resolvable:$true] %s760_s30 }
 0x162   : > { %p960_p6 = scmp.ne.s32.totalorder %s750_s28, %s959_s7  ;;  %p966_p9 = scmp.lt.s32.totalorder %s750_s28, %s750_s28 }
 0x163   : > { %p967_p10 = scmp.lt.s32.totalorder %s959_s7, %s959_s7 }
 0x164   : > { %p961_p7 = pnand %p960_p6, %p940_p5 }
 0x165   : > { %v715_v22 = vld [vmem:[#allocation5] sm:$0x1]  ;;  %v720_v23 = vld [vmem:[#allocation5 + $0x1] sm:$0x1]  ;;  %p968_p11 = por %p967_p10, %p966_p9 }
 0x166   : > { %v716_v24 = vsub.f32 %v696_v59, %v715_v22  ;;  %v721_v26 = vadd.f32 %v720_v23, %v709_v9  ;;  %p962_p8 = pneg %p961_p7 }
 0x168   : > { %v717_v25 = vmul.f32 %v716_v24, %v670_v14  ;;  %v722_v27 = vmul.f32 %v716_v24, %v716_v24  ;;  %p969_p12 = pnand %p968_p11, %p962_p8 }
 0x16a   : > { %972 = shalt.err (!%p969_p12)
}
 0x16b   : > { %933 = dma.vmem_to_hbm [thread:$0]  (%p940_p5), %s750_s28, 32, %s1184_s5, [#allocation4]   ;;  %v718_v28 = vadd.f32 %v717_v25, %v715_v22  ;;  %v723_v29 = vmul.f32 %v722_v27, %v683_v17 }
 0x16c   : > { %s983_s10 = scalar_lea.vmem %s761_s30, 32  ;;  %p990_p2 = scmp.lt.s32.totalorder %s761_s30, %s761_s30 }
 0x16d   : > { %719 = vst.msk [vmem:[#allocation5] sm:$0x1] %vm673_vm6, %v718_v28  ;;  %v724_v30 = vadd.f32 %v723_v29, %v721_v26  ;;  %p984_p13 = scmp.ne.s32.totalorder %s761_s30, %s983_s10  ;;  %p991_p3 = scmp.lt.s32.totalorder %s983_s10, %s983_s10 }
 0x16f   : > { %725 = vst.msk [vmem:[#allocation5 + $0x1] sm:$0x1] %vm673_vm6, %v724_v30  ;;  %p985_p0 = pnand %p984_p13, %p940_p5  ;;  %p992_p4 = por %p991_p3, %p990_p2 }
 0x171   : > { %p986_p1 = pneg %p985_p0 }
 0x173   : > { %p993_p6 = pnand %p992_p4, %p986_p1 }
 0x175   : > { %996 = shalt.err (!%p993_p6)
}
 0x176   : > { %935 = dma.vmem_to_hbm [thread:$0]  (%p940_p5), %s761_s30, 32, %s1185_s6, [#allocation6]  }
 0x177   : > { %1012 = dma.done.wait (%p940_p5), [#allocation4], 32  }
 0x178   : > { %1014 = vsyncadd (%p940_p5), [#allocation4], 4294967264 }
 0x179   : > { %1016 = dma.done.wait (%p940_p5), [#allocation6], 32  }
 0x17a   : > { %1018 = vsyncadd (%p940_p5), [#allocation6], 4294967264 }
 0x17b PF: > { %s19_s21 = sadd.s32 1, %s1021_s21  }
 0x17c   : > { %p16_p7 = scmp.ge.s32.totalorder %s19_s21, 4  }
 0x17e   :  { %18 = sbr.rel (!%p16_p7) target bundleno = 2 (0x2), region = 105 }
 0x183   :  { %793 = vsyncpa [#allocation4], 1 }
 0x184   :  { %795 = vsyncpa [#allocation4 + $0x1], 1 }
 0x185   :  { %796 = vsyncpa [#allocation6], 1 }

</bundles_post_ra>
